<compile_context>
chip_gen: v6e
topology: v6e:2x2x1
jax: 0.10.0
libtpu: 0.0.40
codegen_flags: <defaults>
</compile_context>

<pallas_src>
import jax
import jax.numpy as jnp
from jax import lax
from jax.experimental import pallas as pl
from jax.experimental.pallas import tpu as pltpu


_CHUNK = 1024  # batch columns (lanes) processed per inner-loop step


def mlp_kernel(x_ref, w1_ref, b1_ref, w2_ref, b2_ref, w3_ref, b3_ref, o_ref):
    # x_ref: (5, TB) feature-major (batch on lanes), o_ref: (3, TB)
    # wN_ref: (out, in) f32, bN_ref: (out, 1) f32
    tb = x_ref.shape[-1]
    ch = min(_CHUNK, tb)
    n_chunks = tb // ch  # TB is chosen so this divides exactly

    # Hoist the (tiny) weight/bias loads out of the chunk loop.
    w1 = w1_ref[...]
    b1 = b1_ref[...]
    w2 = w2_ref[...]
    b2 = b2_ref[...]
    w3 = w3_ref[...]
    b3 = b3_ref[...]

    def dense(w, b, a, relu):
        # K in {5, 10, 5} is far too small for the MXU: do n_in unrolled
        # outer-product broadcast-FMAs on the VPU. Bias is broadcast once as
        # the accumulator init (no per-step broadcast inside the k loop).
        n_out, n_in = w.shape
        cols = a.shape[-1]
        acc = jnp.broadcast_to(b, (n_out, cols)).astype(jnp.float32)
        for k in range(n_in):  # tiny static trip count, fully unrolled
            acc = acc + w[:, k:k + 1] * a[k:k + 1, :]
        if relu:
            acc = jnp.maximum(acc, 0.0)
        return acc

    def body(j, carry):
        start = j * ch
        if ch % 128 == 0:
            start = pl.multiple_of(start, 128)  # aligned lane-group accesses
        xs = x_ref[:, pl.ds(start, ch)]          # (5,  ch)
        h1 = dense(w1, b1, xs, relu=True)        # (10, ch)
        h2 = dense(w2, b2, h1, relu=True)        # (5,  ch)
        out = dense(w3, b3, h2, relu=False)      # (3,  ch)
        o_ref[:, pl.ds(start, ch)] = out.astype(o_ref.dtype)
        return carry

    # Chunked inner loop bounds live ranges so large TB tiles don't spill.
    lax.fori_loop(0, n_chunks, body, 0)


def _round_up(x, m):
    return ((x + m - 1) // m) * m


def _choose_tb(batch, tb_max=32768):
    """Batch-tile width: lane-dense (multiple of 128), big enough to amortize
    the ~0.35us fixed per-grid-step overhead, small enough to keep ~8
    pipelined grid steps, and a multiple of the in-kernel chunk width."""
    if batch <= 128:
        return batch                      # single full-extent block
    tb = _round_up(pl.cdiv(batch, 8), 128)
    tb = min(tb, tb_max)
    if tb >= _CHUNK:
        tb = _round_up(tb, _CHUNK)        # inner chunk loop divides evenly
    return tb


def simple_nn_forward_fm(x_fm, params, *, tb_max=32768):
    """Feature-major fast path: x_fm (5, B) -> (3, B).

    No wrapper-side transpose/pad passes; the ragged last batch tile is
    handled by Pallas block clamping (OOB reads are garbage-but-unused,
    OOB writes are masked)."""
    w1, b1, w2, b2, w3, b3 = params
    nf, batch = x_fm.shape
    assert nf == 5
    tb = _choose_tb(batch, tb_max)
    grid = (pl.cdiv(batch, tb),)

    b1c = b1.reshape(-1, 1)
    b2c = b2.reshape(-1, 1)
    b3c = b3.reshape(-1, 1)

    # Weights/biases: full-extent blocks, resident across all grid steps.
    def resident(arr):
        return pl.BlockSpec(arr.shape, lambda i: (0, 0))

    itemsize = jnp.dtype(x_fm.dtype).itemsize
    flops = 2 * batch * (5 * 10 + 10 * 5 + 5 * 3) + batch * (10 + 5)
    bytes_accessed = (itemsize * batch * (5 + 3)
                      + 4 * ((5 * 10 + 10) + (10 * 5 + 5) + (5 * 3 + 3)))

    return pl.pallas_call(
        mlp_kernel,
        out_shape=jax.ShapeDtypeStruct((3, batch), x_fm.dtype),
        grid=grid,
        in_specs=[
            pl.BlockSpec((5, tb), lambda i: (0, i)),   # x tile, double-buffered
            resident(w1), resident(b1c),
            resident(w2), resident(b2c),
            resident(w3), resident(b3c),
        ],
        out_specs=pl.BlockSpec((3, tb), lambda i: (0, i)),
        compiler_params=pltpu.CompilerParams(
            # Batch axis is embarrassingly parallel; on v7x this lets the two
            # TensorCores split the grid steps.
            dimension_semantics=("parallel",),
            vmem_limit_bytes=32 * 1024 * 1024,   # actual need is a few MB
        ),
        cost_estimate=pl.CostEstimate(
            flops=int(flops), transcendentals=0,
            bytes_accessed=int(bytes_accessed)),
    )(x_fm, w1, b1c, w2, b2c, w3, b3c)


def simple_nn_forward(x, params, *, tb_max=32768):
    """PyTorch-layout entry point: x (B, 5) f32 -> (B, 3).

    Keeps the original module semantics; the two thin transposes here are the
    only remaining wrapper passes. Callers that can produce/consume
    feature-major data should use simple_nn_forward_fm directly."""
    batch, nf = x.shape
    assert nf == 5
    out_fm = simple_nn_forward_fm(x.T, params, tb_max=tb_max)   # (3, B)
    return out_fm.T                                             # (B, 3)


def init_params(key):
    # Deterministic init mimicking torch.nn.Linear default:
    # U(-1/sqrt(fan_in), 1/sqrt(fan_in)) for both weight and bias.
    # Weight layout matches PyTorch: (out_features, in_features).
    def linear(key, fan_in, fan_out):
        kw, kb = jax.random.split(key)
        bound = 1.0 / jnp.sqrt(jnp.float32(fan_in))
        w = jax.random.uniform(kw, (fan_out, fan_in), jnp.float32, -bound, bound)
        b = jax.random.uniform(kb, (fan_out,), jnp.float32, -bound, bound)
        return w, b

    k1, k2, k3 = jax.random.split(key, 3)
    w1, b1 = linear(k1, 5, 10)
    w2, b2 = linear(k2, 10, 5)
    w3, b3 = linear(k3, 5, 3)
    return (w1, b1, w2, b2, w3, b3)


def ref_forward(x, params):
    w1, b1, w2, b2, w3, b3 = params
    h = jnp.maximum(x @ w1.T + b1, 0.0)
    h = jnp.maximum(h @ w2.T + b2, 0.0)
    return h @ w3.T + b3


if __name__ == "__main__":
    key = jax.random.PRNGKey(0)
    kp, kx_small, kx_tiled = jax.random.split(key, 3)
    params = init_params(kp)

    # Small single-block case, and a multi-step case exercising the tiled
    # batch grid with a ragged last tile (no wrapper-side padding).
    for batch, kx in ((8, kx_small), (333, kx_tiled)):
        x = jax.random.normal(kx, (batch, 5), jnp.float32)
        out = jax.block_until_ready(simple_nn_forward(x, params))
        ref = ref_forward(x, params)
        assert out.shape == (batch, 3)
        assert jnp.allclose(out, ref, atol=1e-5, rtol=1e-5), (
            "max abs err = %g" % float(jnp.max(jnp.abs(out - ref))))

    print("KERNEL_OK")
</pallas_src>

<mosaic_0001>
module attributes {stable_mosaic.version = 11 : i64} {
  func.func @mlp_kernel(%arg0: i32, %arg1: memref<5x8xf32, #tpu.memory_space<vmem>>, %arg2: memref<10x5xf32, #tpu.memory_space<vmem>>, %arg3: memref<10x1xf32, #tpu.memory_space<vmem>>, %arg4: memref<5x10xf32, #tpu.memory_space<vmem>>, %arg5: memref<5x1xf32, #tpu.memory_space<vmem>>, %arg6: memref<3x5xf32, #tpu.memory_space<vmem>>, %arg7: memref<3x1xf32, #tpu.memory_space<vmem>>, %arg8: memref<3x8xf32, #tpu.memory_space<vmem>>) attributes {dimension_semantics = [#tpu.dimension_semantics<parallel>], iteration_bounds = array<i64: 1>, scalar_prefetch = 0 : i64, scratch_operands = 0 : i64, tpu.core_type = #tpu.core_type<tc>, window_params = [{transform_indices = @transform_0, window_bounds = array<i64: 5, 8>}, {pipeline_mode = #tpu.pipeline_mode<synchronous>, transform_indices = @transform_1, window_bounds = array<i64: 10, 5>}, {pipeline_mode = #tpu.pipeline_mode<synchronous>, transform_indices = @transform_2, window_bounds = array<i64: 10, 1>}, {pipeline_mode = #tpu.pipeline_mode<synchronous>, transform_indices = @transform_3, window_bounds = array<i64: 5, 10>}, {pipeline_mode = #tpu.pipeline_mode<synchronous>, transform_indices = @transform_4, window_bounds = array<i64: 5, 1>}, {pipeline_mode = #tpu.pipeline_mode<synchronous>, transform_indices = @transform_5, window_bounds = array<i64: 3, 5>}, {pipeline_mode = #tpu.pipeline_mode<synchronous>, transform_indices = @transform_6, window_bounds = array<i64: 3, 1>}, {transform_indices = @transform_7, window_bounds = array<i64: 3, 8>}]} {
    %c0 = arith.constant 0 : index
    %c0_0 = arith.constant 0 : index
    %0 = vector.load %arg2[%c0, %c0_0] : memref<10x5xf32, #tpu.memory_space<vmem>>, vector<10x5xf32>
    %c0_1 = arith.constant 0 : index
    %c0_2 = arith.constant 0 : index
    %1 = vector.load %arg3[%c0_1, %c0_2] : memref<10x1xf32, #tpu.memory_space<vmem>>, vector<10x1xf32>
    %c0_3 = arith.constant 0 : index
    %c0_4 = arith.constant 0 : index
    %2 = vector.load %arg4[%c0_3, %c0_4] : memref<5x10xf32, #tpu.memory_space<vmem>>, vector<5x10xf32>
    %c0_5 = arith.constant 0 : index
    %c0_6 = arith.constant 0 : index
    %3 = vector.load %arg5[%c0_5, %c0_6] : memref<5x1xf32, #tpu.memory_space<vmem>>, vector<5x1xf32>
    %c0_7 = arith.constant 0 : index
    %c0_8 = arith.constant 0 : index
    %4 = vector.load %arg6[%c0_7, %c0_8] : memref<3x5xf32, #tpu.memory_space<vmem>>, vector<3x5xf32>
    %c0_9 = arith.constant 0 : index
    %c0_10 = arith.constant 0 : index
    %5 = vector.load %arg7[%c0_9, %c0_10] : memref<3x1xf32, #tpu.memory_space<vmem>>, vector<3x1xf32>
    %c0_i32 = arith.constant 0 : i32
    %c8_i32 = arith.constant 8 : i32
    %6 = arith.muli %c0_i32, %c8_i32 : i32
    %c0_11 = arith.constant 0 : index
    %7 = arith.index_cast %6 : i32 to index
    %8 = vector.load %arg1[%c0_11, %7] : memref<5x8xf32, #tpu.memory_space<vmem>>, vector<5x8xf32>
    %9 = vector.shape_cast %1 : vector<10x1xf32> to vector<10x1xf32>
    %10 = vector.broadcast %9 : vector<10x1xf32> to vector<10x8xf32>
    %11 = vector.extract_strided_slice %0 {offsets = [0, 0], sizes = [10, 1], strides = [1, 1]} : vector<10x5xf32> to vector<10x1xf32>
    %12 = vector.extract_strided_slice %8 {offsets = [0, 0], sizes = [1, 8], strides = [1, 1]} : vector<5x8xf32> to vector<1x8xf32>
    %13 = vector.broadcast %11 : vector<10x1xf32> to vector<10x8xf32>
    %14 = vector.broadcast %12 : vector<1x8xf32> to vector<10x8xf32>
    %15 = arith.mulf %13, %14 : vector<10x8xf32>
    %16 = arith.addf %10, %15 : vector<10x8xf32>
    %17 = vector.extract_strided_slice %0 {offsets = [0, 1], sizes = [10, 1], strides = [1, 1]} : vector<10x5xf32> to vector<10x1xf32>
    %18 = vector.extract_strided_slice %8 {offsets = [1, 0], sizes = [1, 8], strides = [1, 1]} : vector<5x8xf32> to vector<1x8xf32>
    %19 = vector.broadcast %17 : vector<10x1xf32> to vector<10x8xf32>
    %20 = vector.broadcast %18 : vector<1x8xf32> to vector<10x8xf32>
    %21 = arith.mulf %19, %20 : vector<10x8xf32>
    %22 = arith.addf %16, %21 : vector<10x8xf32>
    %23 = vector.extract_strided_slice %0 {offsets = [0, 2], sizes = [10, 1], strides = [1, 1]} : vector<10x5xf32> to vector<10x1xf32>
    %24 = vector.extract_strided_slice %8 {offsets = [2, 0], sizes = [1, 8], strides = [1, 1]} : vector<5x8xf32> to vector<1x8xf32>
    %25 = vector.broadcast %23 : vector<10x1xf32> to vector<10x8xf32>
    %26 = vector.broadcast %24 : vector<1x8xf32> to vector<10x8xf32>
    %27 = arith.mulf %25, %26 : vector<10x8xf32>
    %28 = arith.addf %22, %27 : vector<10x8xf32>
    %29 = vector.extract_strided_slice %0 {offsets = [0, 3], sizes = [10, 1], strides = [1, 1]} : vector<10x5xf32> to vector<10x1xf32>
    %30 = vector.extract_strided_slice %8 {offsets = [3, 0], sizes = [1, 8], strides = [1, 1]} : vector<5x8xf32> to vector<1x8xf32>
    %31 = vector.broadcast %29 : vector<10x1xf32> to vector<10x8xf32>
    %32 = vector.broadcast %30 : vector<1x8xf32> to vector<10x8xf32>
    %33 = arith.mulf %31, %32 : vector<10x8xf32>
    %34 = arith.addf %28, %33 : vector<10x8xf32>
    %35 = vector.extract_strided_slice %0 {offsets = [0, 4], sizes = [10, 1], strides = [1, 1]} : vector<10x5xf32> to vector<10x1xf32>
    %36 = vector.extract_strided_slice %8 {offsets = [4, 0], sizes = [1, 8], strides = [1, 1]} : vector<5x8xf32> to vector<1x8xf32>
    %37 = vector.broadcast %35 : vector<10x1xf32> to vector<10x8xf32>
    %38 = vector.broadcast %36 : vector<1x8xf32> to vector<10x8xf32>
    %39 = arith.mulf %37, %38 : vector<10x8xf32>
    %40 = arith.addf %34, %39 : vector<10x8xf32>
    %cst = arith.constant 0.000000e+00 : f32
    %41 = vector.broadcast %cst : f32 to vector<10x8xf32>
    %42 = arith.maximumf %40, %41 : vector<10x8xf32>
    %43 = vector.shape_cast %3 : vector<5x1xf32> to vector<5x1xf32>
    %44 = vector.broadcast %43 : vector<5x1xf32> to vector<5x8xf32>
    %45 = vector.extract_strided_slice %2 {offsets = [0, 0], sizes = [5, 1], strides = [1, 1]} : vector<5x10xf32> to vector<5x1xf32>
    %46 = vector.extract_strided_slice %42 {offsets = [0, 0], sizes = [1, 8], strides = [1, 1]} : vector<10x8xf32> to vector<1x8xf32>
    %47 = vector.broadcast %45 : vector<5x1xf32> to vector<5x8xf32>
    %48 = vector.broadcast %46 : vector<1x8xf32> to vector<5x8xf32>
    %49 = arith.mulf %47, %48 : vector<5x8xf32>
    %50 = arith.addf %44, %49 : vector<5x8xf32>
    %51 = vector.extract_strided_slice %2 {offsets = [0, 1], sizes = [5, 1], strides = [1, 1]} : vector<5x10xf32> to vector<5x1xf32>
    %52 = vector.extract_strided_slice %42 {offsets = [1, 0], sizes = [1, 8], strides = [1, 1]} : vector<10x8xf32> to vector<1x8xf32>
    %53 = vector.broadcast %51 : vector<5x1xf32> to vector<5x8xf32>
    %54 = vector.broadcast %52 : vector<1x8xf32> to vector<5x8xf32>
    %55 = arith.mulf %53, %54 : vector<5x8xf32>
    %56 = arith.addf %50, %55 : vector<5x8xf32>
    %57 = vector.extract_strided_slice %2 {offsets = [0, 2], sizes = [5, 1], strides = [1, 1]} : vector<5x10xf32> to vector<5x1xf32>
    %58 = vector.extract_strided_slice %42 {offsets = [2, 0], sizes = [1, 8], strides = [1, 1]} : vector<10x8xf32> to vector<1x8xf32>
    %59 = vector.broadcast %57 : vector<5x1xf32> to vector<5x8xf32>
    %60 = vector.broadcast %58 : vector<1x8xf32> to vector<5x8xf32>
    %61 = arith.mulf %59, %60 : vector<5x8xf32>
    %62 = arith.addf %56, %61 : vector<5x8xf32>
    %63 = vector.extract_strided_slice %2 {offsets = [0, 3], sizes = [5, 1], strides = [1, 1]} : vector<5x10xf32> to vector<5x1xf32>
    %64 = vector.extract_strided_slice %42 {offsets = [3, 0], sizes = [1, 8], strides = [1, 1]} : vector<10x8xf32> to vector<1x8xf32>
    %65 = vector.broadcast %63 : vector<5x1xf32> to vector<5x8xf32>
    %66 = vector.broadcast %64 : vector<1x8xf32> to vector<5x8xf32>
    %67 = arith.mulf %65, %66 : vector<5x8xf32>
    %68 = arith.addf %62, %67 : vector<5x8xf32>
    %69 = vector.extract_strided_slice %2 {offsets = [0, 4], sizes = [5, 1], strides = [1, 1]} : vector<5x10xf32> to vector<5x1xf32>
    %70 = vector.extract_strided_slice %42 {offsets = [4, 0], sizes = [1, 8], strides = [1, 1]} : vector<10x8xf32> to vector<1x8xf32>
    %71 = vector.broadcast %69 : vector<5x1xf32> to vector<5x8xf32>
    %72 = vector.broadcast %70 : vector<1x8xf32> to vector<5x8xf32>
    %73 = arith.mulf %71, %72 : vector<5x8xf32>
    %74 = arith.addf %68, %73 : vector<5x8xf32>
    %75 = vector.extract_strided_slice %2 {offsets = [0, 5], sizes = [5, 1], strides = [1, 1]} : vector<5x10xf32> to vector<5x1xf32>
    %76 = vector.extract_strided_slice %42 {offsets = [5, 0], sizes = [1, 8], strides = [1, 1]} : vector<10x8xf32> to vector<1x8xf32>
    %77 = vector.broadcast %75 : vector<5x1xf32> to vector<5x8xf32>
    %78 = vector.broadcast %76 : vector<1x8xf32> to vector<5x8xf32>
    %79 = arith.mulf %77, %78 : vector<5x8xf32>
    %80 = arith.addf %74, %79 : vector<5x8xf32>
    %81 = vector.extract_strided_slice %2 {offsets = [0, 6], sizes = [5, 1], strides = [1, 1]} : vector<5x10xf32> to vector<5x1xf32>
    %82 = vector.extract_strided_slice %42 {offsets = [6, 0], sizes = [1, 8], strides = [1, 1]} : vector<10x8xf32> to vector<1x8xf32>
    %83 = vector.broadcast %81 : vector<5x1xf32> to vector<5x8xf32>
    %84 = vector.broadcast %82 : vector<1x8xf32> to vector<5x8xf32>
    %85 = arith.mulf %83, %84 : vector<5x8xf32>
    %86 = arith.addf %80, %85 : vector<5x8xf32>
    %87 = vector.extract_strided_slice %2 {offsets = [0, 7], sizes = [5, 1], strides = [1, 1]} : vector<5x10xf32> to vector<5x1xf32>
    %88 = vector.extract_strided_slice %42 {offsets = [7, 0], sizes = [1, 8], strides = [1, 1]} : vector<10x8xf32> to vector<1x8xf32>
    %89 = vector.broadcast %87 : vector<5x1xf32> to vector<5x8xf32>
    %90 = vector.broadcast %88 : vector<1x8xf32> to vector<5x8xf32>
    %91 = arith.mulf %89, %90 : vector<5x8xf32>
    %92 = arith.addf %86, %91 : vector<5x8xf32>
    %93 = vector.extract_strided_slice %2 {offsets = [0, 8], sizes = [5, 1], strides = [1, 1]} : vector<5x10xf32> to vector<5x1xf32>
    %94 = vector.extract_strided_slice %42 {offsets = [8, 0], sizes = [1, 8], strides = [1, 1]} : vector<10x8xf32> to vector<1x8xf32>
    %95 = vector.broadcast %93 : vector<5x1xf32> to vector<5x8xf32>
    %96 = vector.broadcast %94 : vector<1x8xf32> to vector<5x8xf32>
    %97 = arith.mulf %95, %96 : vector<5x8xf32>
    %98 = arith.addf %92, %97 : vector<5x8xf32>
    %99 = vector.extract_strided_slice %2 {offsets = [0, 9], sizes = [5, 1], strides = [1, 1]} : vector<5x10xf32> to vector<5x1xf32>
    %100 = vector.extract_strided_slice %42 {offsets = [9, 0], sizes = [1, 8], strides = [1, 1]} : vector<10x8xf32> to vector<1x8xf32>
    %101 = vector.broadcast %99 : vector<5x1xf32> to vector<5x8xf32>
    %102 = vector.broadcast %100 : vector<1x8xf32> to vector<5x8xf32>
    %103 = arith.mulf %101, %102 : vector<5x8xf32>
    %104 = arith.addf %98, %103 : vector<5x8xf32>
    %cst_12 = arith.constant 0.000000e+00 : f32
    %105 = vector.broadcast %cst_12 : f32 to vector<5x8xf32>
    %106 = arith.maximumf %104, %105 : vector<5x8xf32>
    %107 = vector.shape_cast %5 : vector<3x1xf32> to vector<3x1xf32>
    %108 = vector.broadcast %107 : vector<3x1xf32> to vector<3x8xf32>
    %109 = vector.extract_strided_slice %4 {offsets = [0, 0], sizes = [3, 1], strides = [1, 1]} : vector<3x5xf32> to vector<3x1xf32>
    %110 = vector.extract_strided_slice %106 {offsets = [0, 0], sizes = [1, 8], strides = [1, 1]} : vector<5x8xf32> to vector<1x8xf32>
    %111 = vector.broadcast %109 : vector<3x1xf32> to vector<3x8xf32>
    %112 = vector.broadcast %110 : vector<1x8xf32> to vector<3x8xf32>
    %113 = arith.mulf %111, %112 : vector<3x8xf32>
    %114 = arith.addf %108, %113 : vector<3x8xf32>
    %115 = vector.extract_strided_slice %4 {offsets = [0, 1], sizes = [3, 1], strides = [1, 1]} : vector<3x5xf32> to vector<3x1xf32>
    %116 = vector.extract_strided_slice %106 {offsets = [1, 0], sizes = [1, 8], strides = [1, 1]} : vector<5x8xf32> to vector<1x8xf32>
    %117 = vector.broadcast %115 : vector<3x1xf32> to vector<3x8xf32>
    %118 = vector.broadcast %116 : vector<1x8xf32> to vector<3x8xf32>
    %119 = arith.mulf %117, %118 : vector<3x8xf32>
    %120 = arith.addf %114, %119 : vector<3x8xf32>
    %121 = vector.extract_strided_slice %4 {offsets = [0, 2], sizes = [3, 1], strides = [1, 1]} : vector<3x5xf32> to vector<3x1xf32>
    %122 = vector.extract_strided_slice %106 {offsets = [2, 0], sizes = [1, 8], strides = [1, 1]} : vector<5x8xf32> to vector<1x8xf32>
    %123 = vector.broadcast %121 : vector<3x1xf32> to vector<3x8xf32>
    %124 = vector.broadcast %122 : vector<1x8xf32> to vector<3x8xf32>
    %125 = arith.mulf %123, %124 : vector<3x8xf32>
    %126 = arith.addf %120, %125 : vector<3x8xf32>
    %127 = vector.extract_strided_slice %4 {offsets = [0, 3], sizes = [3, 1], strides = [1, 1]} : vector<3x5xf32> to vector<3x1xf32>
    %128 = vector.extract_strided_slice %106 {offsets = [3, 0], sizes = [1, 8], strides = [1, 1]} : vector<5x8xf32> to vector<1x8xf32>
    %129 = vector.broadcast %127 : vector<3x1xf32> to vector<3x8xf32>
    %130 = vector.broadcast %128 : vector<1x8xf32> to vector<3x8xf32>
    %131 = arith.mulf %129, %130 : vector<3x8xf32>
    %132 = arith.addf %126, %131 : vector<3x8xf32>
    %133 = vector.extract_strided_slice %4 {offsets = [0, 4], sizes = [3, 1], strides = [1, 1]} : vector<3x5xf32> to vector<3x1xf32>
    %134 = vector.extract_strided_slice %106 {offsets = [4, 0], sizes = [1, 8], strides = [1, 1]} : vector<5x8xf32> to vector<1x8xf32>
    %135 = vector.broadcast %133 : vector<3x1xf32> to vector<3x8xf32>
    %136 = vector.broadcast %134 : vector<1x8xf32> to vector<3x8xf32>
    %137 = arith.mulf %135, %136 : vector<3x8xf32>
    %138 = arith.addf %132, %137 : vector<3x8xf32>
    %c0_13 = arith.constant 0 : index
    %139 = arith.index_cast %6 : i32 to index
    %140 = vector.load %arg8[%c0_13, %139] : memref<3x8xf32, #tpu.memory_space<vmem>>, vector<3x8xf32>
    tpu.vector_store %arg8[%c0_13, %139], %138 {strides = array<i32>} : memref<3x8xf32, #tpu.memory_space<vmem>>, vector<3x8xf32>,
    %c1_i32 = arith.constant 1 : i32
    return
  }
  func.func @transform_0(%arg0: i32) -> (i32, i32) {
    %c0_i32 = arith.constant 0 : i32
    %c0_i32_0 = arith.constant 0 : i32
    return %c0_i32, %arg0 : i32, i32
  }
  func.func @transform_1(%arg0: i32) -> (i32, i32) {
    %c0_i32 = arith.constant 0 : i32
    %c0_i32_0 = arith.constant 0 : i32
    %c0_i32_1 = arith.constant 0 : i32
    return %c0_i32, %c0_i32_0 : i32, i32
  }
  func.func @transform_2(%arg0: i32) -> (i32, i32) {
    %c0_i32 = arith.constant 0 : i32
    %c0_i32_0 = arith.constant 0 : i32
    %c0_i32_1 = arith.constant 0 : i32
    return %c0_i32, %c0_i32_0 : i32, i32
  }
  func.func @transform_3(%arg0: i32) -> (i32, i32) {
    %c0_i32 = arith.constant 0 : i32
    %c0_i32_0 = arith.constant 0 : i32
    %c0_i32_1 = arith.constant 0 : i32
    return %c0_i32, %c0_i32_0 : i32, i32
  }
  func.func @transform_4(%arg0: i32) -> (i32, i32) {
    %c0_i32 = arith.constant 0 : i32
    %c0_i32_0 = arith.constant 0 : i32
    %c0_i32_1 = arith.constant 0 : i32
    return %c0_i32, %c0_i32_0 : i32, i32
  }
  func.func @transform_5(%arg0: i32) -> (i32, i32) {
    %c0_i32 = arith.constant 0 : i32
    %c0_i32_0 = arith.constant 0 : i32
    %c0_i32_1 = arith.constant 0 : i32
    return %c0_i32, %c0_i32_0 : i32, i32
  }
  func.func @transform_6(%arg0: i32) -> (i32, i32) {
    %c0_i32 = arith.constant 0 : i32
    %c0_i32_0 = arith.constant 0 : i32
    %c0_i32_1 = arith.constant 0 : i32
    return %c0_i32, %c0_i32_0 : i32, i32
  }
  func.func @transform_7(%arg0: i32) -> (i32, i32) {
    %c0_i32 = arith.constant 0 : i32
    %c0_i32_0 = arith.constant 0 : i32
    return %c0_i32, %arg0 : i32, i32
  }
}

</mosaic_0001>

<bundles_post_ra>
// kernel: tpu_custom_call.1
= control target key start
LH: loop header
LB: loop body
LE: loop exit
PB: predicated region body
PF: predicated region fallthrough
CT: control target
= control target key end

     0   :  { %v366_v1 = vmov 3   ;;  %v367_v2 = vmov 1   ;;  %s484_s0 = inlined_call_operand.vmem [shape: f32[5,8], index: 0, kind: input, shape index: {}]   ;;  %s485_s1 = inlined_call_operand.vmem [shape: f32[10,5], index: 1, kind: input, shape index: {}]   ;;  %s486_s2 = inlined_call_operand.vmem [shape: f32[10,1], index: 2, kind: input, shape index: {}]   ;;  %s487_s3 = inlined_call_operand.vmem [shape: f32[5,10], index: 3, kind: input, shape index: {}]   ;;  %s488_s4 = inlined_call_operand.vmem [shape: f32[5,1], index: 4, kind: input, shape index: {}]   ;;  %s489_s5 = inlined_call_operand.vmem [shape: f32[3,5], index: 5, kind: input, shape index: {}]   ;;  %s490_s6 = inlined_call_operand.vmem [shape: f32[3,1], index: 6, kind: input, shape index: {}]   ;;  %s491_s7 = inlined_call_operand.hbm [shape: f32[3,8], index: 7, kind: output, shape index: {}]  }
   0x1   :  { %v27_v0 = vld [vmem:[%s485_s1] sm:$0xff]  ;;  %322 = vset.pattern.permute.xlu0 %v366_v1  ;;  %320 = vset.pattern.permute.xlu1 %v367_v2 }
   0x2   :  { %97 = vperm.xlu0 %322, %v27_v0   ;;  %65 = vperm.xlu1 %320, %v27_v0  }
   0x3   :  { %12 = vsyncpa [#allocation3], 0  ;;  %v368_v3 = vmov 0   ;;  %v369_v4 = vmov 2   ;;  %v29_v5 = vld [vmem:[%s486_s2] sm:$0xff]  ;;  %v370_v6 = vmov 4   ;;  %v56_v18 = vlaneseq }
   0x4   :  { %v31_v7 = vld [vmem:[%s487_s3] sm:$0x1f]  ;;  %v28_v8 = vld [vmem:[%s485_s1 + $0x8] sm:$0x3]  ;;  %v371_v11 = vmov 5   ;;  %v372_v12 = vmov 8  }
   0x5   :  { %v32_v9 = vld [vmem:[%s488_s4] sm:$0x1f]  ;;  %v30_v10 = vld [vmem:[%s486_s2 + $0x8] sm:$0x3]  ;;  %v373_v15 = vmov 6   ;;  %v374_v16 = vmov 7  }
   0x6   :  { %323 = vset.pattern.permute.xlu0 %v368_v3  ;;  %321 = vset.pattern.permute.xlu1 %v369_v4  ;;  %v34_v13 = vld [vmem:[%s490_s6] sm:$0x7]  ;;  %v375_v17 = vmov 9   ;;  %v441_v19 = vshrl.u32 %v56_v18, 7  ;;  %vm293_vm0 = vcmask 59392  }
   0x7   :  { %48 = vperm.xlu0 %323, %v27_v0   ;;  %81 = vperm.xlu1 %321, %v27_v0   ;;  %v33_v14 = vld [vmem:[%s489_s5] sm:$0x7] }
   0x8   :  { %v444_v20 = vsub.s32 0, %v441_v19  ;;  %v35_v23 = vld [vmem:[%s484_s0] sm:$0x1f]  ;;  %v450_v24 = vsub.s32 1, %v441_v19  ;;  %v455_v30 = vsub.s32 2, %v441_v19  ;;  %v458_v31 = vsub.s32 3, %v441_v19 }
   0x9   :  { %v463_v40 = vsub.s32 4, %v441_v19  ;;  %s376_s0 = smov [#allocation2]  }
   0xa   :  { %v59_v25 = vrot.slane %v35_v23, %v444_v20  ;;  %v75_v28 = vrot.slane %v35_v23, %v450_v24  ;;  %v91_v34 = vrot.slane %v35_v23, %v455_v30  ;;  %v107_v37 = vrot.slane %v35_v23, %v458_v31  ;;  %s301_s13 = sshll.u32 %s376_s0, 4  ;;  %s302_s13 = int_to_ptr.vmem [resolvable:$true] %s301_s13 }
   0xb   :  { %38 = vperm.xlu0 %323, %v29_v5   ;;  %324 = vset.pattern.permute.xlu1 %v370_v6  ;;  %v123_v44 = vrot.slane %v35_v23, %v463_v40  ;;  %v202_v23 = vsub.s32 6, %v441_v19  ;;  %s344_s14 = scalar_lea.vmem %s302_s13, 64  ;;  %p349_p1 = scmp.lt.s32.totalorder %s302_s13, %s302_s13 }
   0xc   :  { %113 = vperm.xlu1 %324, %v27_v0   ;;  %p345_p0 = scmp.ne.s32.totalorder %s302_s13, %s344_s14  ;;  %p350_p2 = scmp.lt.s32.totalorder %s344_s14, %s344_s14 }
   0xe   :  { %p351_p3 = por %p350_p2, %p349_p1 }
   0xf   :  { %137 = vperm.xlu0 %323, %v31_v7  }
  0x10   :  { %325 = vset.pattern.permute.xlu1 %v368_v3  ;;  %p352_p4 = pnand %p351_p3, %p345_p0 }
  0x11   :  { %53 = vperm.xlu1 %325, %v28_v8  }
  0x13   :  { %132 = vperm.xlu0 %323, %v32_v9  }
  0x15   :  { %43 = vperm.xlu1 %325, %v30_v10  }
  0x17   :  { %327 = vset.pattern.permute.xlu0 %v369_v4 }
  0x18   :  { %85 = vperm.xlu0 %327, %v28_v8  }
  0x19   :  { %326 = vset.pattern.permute.xlu1 %v367_v2 }
  0x1a   :  { %69 = vperm.xlu1 %326, %v28_v8  }
  0x1c   :  { %330 = vset.pattern.permute.xlu0 %v366_v1 }
  0x1d   :  { %167 = vperm.xlu0 %330, %v31_v7  }
  0x1e   :  { %147 = vperm.xlu1 %326, %v31_v7  }
  0x21   :  { %332 = vset.pattern.permute.xlu0 %v371_v11 }
  0x22   :  { %187 = vperm.xlu0 %332, %v31_v7   ;;  %328 = vset.pattern.permute.xlu1 %v369_v4 }
  0x23   :  { %157 = vperm.xlu1 %328, %v31_v7  }
  0x26   :  { %335 = vset.pattern.permute.xlu0 %v372_v12 }
  0x27   :  { %329 = vset.pattern.permute.xlu1 %v366_v1  ;;  %217 = vperm.xlu0 %335, %v31_v7  }
  0x28   :  { %101 = vperm.xlu1 %329, %v28_v8  }
  0x2b   :  { %338 = vset.pattern.permute.xlu0 %v368_v3 }
  0x2c   :  { %331 = vset.pattern.permute.xlu1 %v370_v6  ;;  %239 = vperm.xlu0 %338, %v34_v13  }
  0x2d   :  { %117 = vperm.xlu1 %331, %v28_v8  }
  0x30   :  { %341 = vset.pattern.permute.xlu0 %v366_v1 }
  0x31   :  { %177 = vperm.xlu1 %331, %v31_v7   ;;  %274 = vperm.xlu0 %341, %v33_v14  }
  0x35   :  { %333 = vset.pattern.permute.xlu1 %v373_v15  ;;  %343 = vset.pattern.permute.xlu0 %v370_v6 }
  0x36   :  { %197 = vperm.xlu1 %333, %v31_v7  }
  0x3a   :  { %334 = vset.pattern.permute.xlu1 %v374_v16 }
  0x3b   :  { %207 = vperm.xlu1 %334, %v31_v7  }
  0x3f   :  { %336 = vset.pattern.permute.xlu1 %v375_v17 }
  0x40   :  { %227 = vperm.xlu1 %336, %v31_v7  }
  0x44   :  { %337 = vset.pattern.permute.xlu1 %v368_v3 }
  0x45   :  { %244 = vperm.xlu1 %337, %v33_v14  }
  0x49   :  { %339 = vset.pattern.permute.xlu1 %v367_v2 }
  0x4a   :  { %254 = vperm.xlu1 %339, %v33_v14  }
  0x4e   :  { %340 = vset.pattern.permute.xlu1 %v369_v4 }
  0x4f   :  { %264 = vperm.xlu1 %340, %v33_v14  }
  0x53   :  { %342 = vset.pattern.permute.xlu1 %v370_v6 }
  0x54   :  { %284 = vperm.xlu1 %342, %v33_v14   ;;  %v192_v14 = vsub.s32 5, %v441_v19 }
  0x7d   :  { %v66_v21 = vpop.permute.xlu1 %65  ;;  %v98_v22 = vpop.permute.xlu0 %97 }
  0x7e   :  { %v76_v33 = vmul.f32 %v75_v28, %v66_v21  ;;  %v108_v42 = vmul.f32 %v107_v37, %v98_v22 }
  0x82   :  { %v49_v26 = vpop.permute.xlu0 %48  ;;  %v82_v27 = vpop.permute.xlu1 %81 }
  0x83   :  { %v60_v29 = vmul.f32 %v59_v25, %v49_v26  ;;  %v92_v39 = vmul.f32 %v91_v34, %v82_v27 }
  0x86   :  { %v39_v32 = vpop.permute.xlu0 %38 }
  0x87   :  { %v62_v35 = vadd.f32 %v60_v29, %v39_v32  ;;  %v114_v36 = vpop.permute.xlu1 %113 }
  0x88   :  { %v124_v47 = vmul.f32 %v123_v44, %v114_v36 }
  0x89   :  { %v78_v38 = vadd.f32 %v76_v33, %v62_v35 }
  0x8a   :  { %v138_v50 = vpop.permute.xlu0 %137 }
  0x8b   :  { %v94_v43 = vadd.f32 %v92_v39, %v78_v38 }
  0x8c   :  { %v54_v41 = vpop.permute.xlu1 %53 }
  0x8d   :  { %v110_v46 = vadd.f32 %v108_v42, %v94_v43  ;;  %v61_v57 = vmul.f32 %v59_v25, %v54_v41 }
  0x8e   :  { %v133_v53 = vpop.permute.xlu0 %132 }
  0x8f   :  { %v126_v48 = vadd.f32 %v124_v47, %v110_v46 }
  0x90   :  { %v44_v45 = vpop.permute.xlu1 %43 }
  0x91   :  { %v128_v51 = vmax.f32 %v126_v48, 0.0  ;;  %v63_v61 = vadd.f32 %v61_v57, %v44_v45 }
  0x93   :  { %v143_v54 = vrot.slane %v128_v51, %v444_v20  ;;  %v153_v59 = vrot.slane %v128_v51, %v450_v24  ;;  %v86_v60 = vpop.permute.xlu0 %85  ;;  %v163_v63 = vrot.slane %v128_v51, %v455_v30  ;;  %v173_v9 = vrot.slane %v128_v51, %v458_v31 }
  0x94   :  { %v93_v2 = vmul.f32 %v91_v34, %v86_v60  ;;  %v183_v16 = vrot.slane %v128_v51, %v463_v40  ;;  %v193_v26 = vrot.slane %v128_v51, %v192_v14  ;;  %v203_v32 = vrot.slane %v128_v51, %v202_v23 }
  0x95   :  { %v70_v49 = vpop.permute.xlu1 %69  ;;  %v144_v56 = vmul.f32 %v143_v54, %v138_v50  ;;  %v212_v34 = vsub.s32 7, %v441_v19 }
  0x96   :  { %v77_v58 = vmul.f32 %v75_v28, %v70_v49 }
  0x97   :  { %v145_v1 = vadd.f32 %v144_v56, %v133_v53  ;;  %v213_v38 = vrot.slane %v128_v51, %v212_v34 }
  0x98   :  { %v79_v3 = vadd.f32 %v77_v58, %v63_v61  ;;  %v168_v7 = vpop.permute.xlu0 %167 }
  0x99   :  { %v148_v52 = vpop.permute.xlu1 %147  ;;  %v174_v13 = vmul.f32 %v173_v9, %v168_v7 }
  0x9a   :  { %v154_v62 = vmul.f32 %v153_v59, %v148_v52  ;;  %v95_v11 = vadd.f32 %v93_v2, %v79_v3 }
  0x9c   :  { %v155_v5 = vadd.f32 %v154_v62, %v145_v1 }
  0x9d   :  { %v188_v25 = vpop.permute.xlu0 %187 }
  0x9e   :  { %v158_v55 = vpop.permute.xlu1 %157  ;;  %v194_v28 = vmul.f32 %v193_v26, %v188_v25 }
  0x9f   :  { %v164_v4 = vmul.f32 %v163_v63, %v158_v55 }
  0xa1   :  { %v165_v10 = vadd.f32 %v164_v4, %v155_v5 }
  0xa2   :  { %v218_v39 = vpop.permute.xlu0 %217 }
  0xa3   :  { %v102_v0 = vpop.permute.xlu1 %101  ;;  %v175_v21 = vadd.f32 %v174_v13, %v165_v10 }
  0xa4   :  { %v109_v6 = vmul.f32 %v107_v37, %v102_v0 }
  0xa6   :  { %v111_v15 = vadd.f32 %v109_v6, %v95_v11 }
  0xa7   :  { %v240_v54 = vpop.permute.xlu0 %239 }
  0xa8   :  { %v118_v8 = vpop.permute.xlu1 %117 }
  0xa9   :  { %v125_v12 = vmul.f32 %v123_v44, %v118_v8 }
  0xab   :  { %v127_v18 = vadd.f32 %v125_v12, %v111_v15 }
  0xac   :  { %v178_v17 = vpop.permute.xlu1 %177  ;;  %v275_v61 = vpop.permute.xlu0 %274 }
  0xad   :  { %v184_v22 = vmul.f32 %v183_v16, %v178_v17  ;;  %v129_v29 = vmax.f32 %v127_v18, 0.0 }
  0xaf   :  { %v185_v27 = vadd.f32 %v184_v22, %v175_v21  ;;  %v223_v37 = vrot.slane %v129_v29, %v444_v20  ;;  %v233_v46 = vrot.slane %v129_v29, %v450_v24 }
  0xb1   :  { %v198_v33 = vpop.permute.xlu1 %197  ;;  %v195_v35 = vadd.f32 %v194_v28, %v185_v27  ;;  %v224_v44 = vmul.f32 %v223_v37, %v218_v39 }
  0xb2   :  { %v204_v36 = vmul.f32 %v203_v32, %v198_v33 }
  0xb4   :  { %v205_v42 = vadd.f32 %v204_v36, %v195_v35 }
  0xb6   :  { %v208_v41 = vpop.permute.xlu1 %207 }
  0xb7   :  { %v214_v43 = vmul.f32 %v213_v38, %v208_v41 }
  0xb9   :  { %v215_v45 = vadd.f32 %v214_v43, %v205_v42 }
  0xbb   :  { %v225_v47 = vadd.f32 %v224_v44, %v215_v45  ;;  %v228_v48 = vpop.permute.xlu1 %227 }
  0xbc   :  { %v234_v49 = vmul.f32 %v233_v46, %v228_v48 }
  0xbe   :  { %v235_v50 = vadd.f32 %v234_v49, %v225_v47 }
  0xc0   :  { %v236_v52 = vmax.f32 %v235_v50, 0.0  ;;  %v245_v53 = vpop.permute.xlu1 %244 }
  0xc2   :  { %v250_v19 = vrot.slane %v236_v52, %v444_v20  ;;  %v260_v51 = vrot.slane %v236_v52, %v450_v24  ;;  %v280_v59 = vrot.slane %v236_v52, %v458_v31  ;;  %v270_v60 = vrot.slane %v236_v52, %v455_v30 }
  0xc3   :  { %v290_v3 = vrot.slane %v236_v52, %v463_v40 }
  0xc4   :  { %v251_v55 = vmul.f32 %v250_v19, %v245_v53  ;;  %v281_v1 = vmul.f32 %v280_v59, %v275_v61 }
  0xc5   :  { %v255_v56 = vpop.permute.xlu1 %254 }
  0xc6   :  { %v252_v57 = vadd.f32 %v251_v55, %v240_v54  ;;  %v261_v58 = vmul.f32 %v260_v51, %v255_v56 }
  0xc8   :  { %v262_v63 = vadd.f32 %v261_v58, %v252_v57 }
  0xca   :  { %v265_v62 = vpop.permute.xlu1 %264 }
  0xcb   :  { %v271_v0 = vmul.f32 %v270_v60, %v265_v62 }
  0xcd   :  { %v272_v2 = vadd.f32 %v271_v0, %v262_v63 }
  0xcf   :  { %v282_v20 = vadd.f32 %v281_v1, %v272_v2  ;;  %v285_v4 = vpop.permute.xlu1 %284 }
  0xd0   :  { %v291_v24 = vmul.f32 %v290_v3, %v285_v4 }
  0xd2   :  { %v292_v5 = vadd.f32 %v291_v24, %v282_v20 }
  0xd4   :  { %294 = vst.msk [vmem:[#allocation2] sm:$0x7] %vm293_vm0, %v292_v5 }
  0xd5   :  { %355 = shalt.err (!%p352_p4)
}
  0xd6   :  { %304 = dma.vmem_to_hbm [thread:$0]  %s302_s13, 64, %s491_s7, [#allocation3]  }
  0xd7   :  { %364 = dma.done.wait [#allocation3], 64  }
  0xd8   :  { %365 = vsyncadd [#allocation3], 4294967232 }
  0xd9   :  { %308 = vsyncpa [#allocation3], 1 }

</bundles_post_ra>
